<compile_context>
chip_gen: v5e
topology: v5e:2x2
jax: 0.10.0
libtpu: 0.0.40
codegen_flags: <defaults>
</compile_context>

<pallas_src>
import jax
import jax.numpy as jnp
from jax.experimental import pallas as pl
from jax.experimental.pallas import tpu as pltpu


# --------------------------------------------------------------------------- #
# Kernel
# --------------------------------------------------------------------------- #
def _action2state_kernel(slow_ref, fast_ref,
                         w_rs_ref, w_rf_ref, b_rec_ref,
                         w_fc1_ref, b_fc1_ref,
                         out_ref,
                         acc_slow, acc_fast):
    """Fused SlowFast head + Action2State head.

    slow_ref : (Bt, Cs, Ss_tile)  bf16   streamed S tile of the slow pathway
    fast_ref : (Bt, Cf, Sf_tile)  bf16   streamed S tile of the fast pathway
    w_rs     : (Cs, D)            f32    head proj (slow half), 1/S_slow folded in
    w_rf     : (Cf, D)            f32    head proj (fast half), 1/S_fast folded in
    b_rec    : (1, D)             f32
    w_fc1    : (D, 128)           f32    fc1 weight zero-padded to 128 lanes
    b_fc1    : (1, 128)           f32    fc1 bias   zero-padded to 128 lanes
    out_ref  : (Bt, 128)          f32    lane-dense padded output block
    acc_*    : VMEM f32 scratch accumulators for the streaming GAP sums
    """
    s = pl.program_id(1)

    @pl.when(s == 0)
    def _init():
        acc_slow[...] = jnp.zeros_like(acc_slow)
        acc_fast[...] = jnp.zeros_like(acc_fast)

    # Streaming global-average-pool: accumulate per-(b, c) sums over this S tile
    # in f32 (inputs arrive as bf16 to halve HBM bytes; kernel is HBM-read bound
    # so the per-step XLU reduce hides under the DMA).
    acc_slow[...] += jnp.sum(slow_ref[...].astype(jnp.float32), axis=-1)
    acc_fast[...] += jnp.sum(fast_ref[...].astype(jnp.float32), axis=-1)

    @pl.when(s == pl.num_programs(1) - 1)
    def _finalize():
        # Head projection, no lane-axis concat: two accumulating MXU matmuls.
        # (The 1/S mean scale is already folded into w_rs / w_rf.)
        rec = jnp.dot(acc_slow[...], w_rs_ref[...],
                      preferred_element_type=jnp.float32)
        rec = rec + jnp.dot(acc_fast[...], w_rf_ref[...],
                            preferred_element_type=jnp.float32)
        rec = rec + b_rec_ref[...]

        # Action2State: ReLU then fc1 (padded to 128 output lanes).
        x = jnp.maximum(rec, 0.0)
        out = jnp.dot(x, w_fc1_ref[...],
                      preferred_element_type=jnp.float32) + b_fc1_ref[...]
        out_ref[...] = out.astype(out_ref.dtype)       # lane-dense store


# --------------------------------------------------------------------------- #
# Tiling helpers
# --------------------------------------------------------------------------- #
def _pick_b_tile(b_pad):
    """Largest batch tile in {32, 16, 8} that divides the (8-padded) batch.
    Never forces extra padded rows through the DMA."""
    for cand in (32, 16, 8):
        if b_pad % cand == 0:
            return cand
    return 8


def _auto_s_tile(s_slow, s_fast, c_slow, c_fast, b_tile, budget_bytes=8 << 20):
    """Pick the largest S tile (multiple of 128, dividing S_slow, with an aligned
    matching fast-pathway tile) whose per-step double-buffered bf16 footprint
    fits the budget.  Falls back to un-tiled (full-S) blocks when S does not
    factor nicely (e.g. real SlowFast S=392, which is not a multiple of 128)."""
    def step_bytes(ts, tf):
        # 2 pipeline buffers x 2 bytes (bf16) x (slow tile + fast tile elements)
        return 2 * 2 * b_tile * (c_slow * ts + c_fast * tf)

    candidates = []
    if s_slow % 128 == 0:
        for ts in range(128, s_slow + 1, 128):
            if s_slow % ts:
                continue
            n_s = s_slow // ts
            if s_fast % n_s:
                continue
            tf = s_fast // n_s
            if tf % 128 != 0 and tf != s_fast:
                continue
            candidates.append((ts, tf))
    if not candidates:
        return s_slow, s_fast                       # un-tiled fallback
    fitting = [c for c in candidates if step_bytes(*c) <= budget_bytes]
    pool = fitting if fitting else candidates[:1]   # smallest valid if over budget
    return max(pool, key=lambda c: c[0])


def _vmem_limit_bytes(b_tile, c_slow, c_fast, ss_tile, sf_tile, d, out_pad):
    """Footprint-derived scoped-VMEM request (conservative 2x margin, capped well
    below v7x's 64 MiB physical VMEM)."""
    act = 2 * 2 * b_tile * (c_slow * ss_tile + c_fast * sf_tile)   # bf16, dbl-buf
    weights = 4 * (c_slow * d + c_fast * d + d + d * out_pad + out_pad)
    outs = 2 * 4 * b_tile * out_pad
    scratch = 4 * b_tile * (c_slow + c_fast)
    need = act + 2 * weights + outs + scratch
    return int(min(56 << 20, max(2 * need, 32 << 20)))


# --------------------------------------------------------------------------- #
# Wrapper
# --------------------------------------------------------------------------- #
def action2state_forward(x2_slow, x2_fast, params, *, s_tile=None):
    """x2_slow: (B, Cs, Ts, H, W), x2_fast: (B, Cf, Tf, H, W)  (NCTHW layout).

    Returns (B, 2, 1) matching `out.unsqueeze(2)`.
    """
    B, Cs, Ts, H, W = x2_slow.shape
    _, Cf, Tf, _, _ = x2_fast.shape
    S_slow = Ts * H * W
    S_fast = Tf * H * W

    # bf16 through the DMA (the kernel is HBM-read bound); f32 accumulation
    # happens inside the kernel.
    slow = x2_slow.reshape(B, Cs, S_slow).astype(jnp.bfloat16)
    fast = x2_fast.reshape(B, Cf, S_fast).astype(jnp.bfloat16)

    # Pad batch to a sublane multiple so vregs / MXU rows are not mostly masked.
    B_pad = ((B + 7) // 8) * 8
    if B_pad != B:
        slow = jnp.pad(slow, ((0, B_pad - B), (0, 0), (0, 0)))
        fast = jnp.pad(fast, ((0, B_pad - B), (0, 0), (0, 0)))
    b_tile = _pick_b_tile(B_pad)
    n_b = B_pad // b_tile

    if s_tile is None:
        ss_tile, sf_tile = _auto_s_tile(S_slow, S_fast, Cs, Cf, b_tile)
    else:
        ss_tile = s_tile
        sf_tile = S_fast // (S_slow // ss_tile)
    n_s = S_slow // ss_tile
    assert S_slow == n_s * ss_tile and S_fast == n_s * sf_tile

    # Fold the 1/S GAP scale into the pre-split, pre-transposed head weights.
    w_rs = (params["w_rec_slow"] * (1.0 / S_slow)).astype(jnp.float32)   # (Cs, D)
    w_rf = (params["w_rec_fast"] * (1.0 / S_fast)).astype(jnp.float32)   # (Cf, D)
    b_rec = params["b_rec"].astype(jnp.float32)                          # (1, D)
    D = w_rs.shape[1]

    # Lane-dense output: zero-pad fc1 to 128 output columns, slice afterwards.
    OUT_PAD = 128
    nc = params["w_fc1"].shape[1]
    w_fc1p = jnp.zeros((D, OUT_PAD), jnp.float32).at[:, :nc].set(params["w_fc1"])
    b_fc1p = jnp.zeros((1, OUT_PAD), jnp.float32).at[:, :nc].set(params["b_fc1"])

    cost = pl.CostEstimate(
        flops=int(2 * B_pad * D * (Cs + Cf + OUT_PAD)
                  + B_pad * (Cs * S_slow + Cf * S_fast)),
        transcendentals=0,
        bytes_accessed=int(slow.size * 2 + fast.size * 2
                           + (w_rs.size + w_rf.size + b_rec.size
                              + w_fc1p.size + b_fc1p.size) * 4
                           + B_pad * OUT_PAD * 4),
    )

    out_padded = pl.pallas_call(
        _action2state_kernel,
        out_shape=jax.ShapeDtypeStruct((B_pad, OUT_PAD), jnp.float32),
        grid=(n_b, n_s),
        in_specs=[
            pl.BlockSpec((b_tile, Cs, ss_tile), lambda b, s: (b, 0, s)),
            pl.BlockSpec((b_tile, Cf, sf_tile), lambda b, s: (b, 0, s)),
            pl.BlockSpec((Cs, D), lambda b, s: (0, 0)),
            pl.BlockSpec((Cf, D), lambda b, s: (0, 0)),
            pl.BlockSpec((1, D), lambda b, s: (0, 0)),
            pl.BlockSpec((D, OUT_PAD), lambda b, s: (0, 0)),
            pl.BlockSpec((1, OUT_PAD), lambda b, s: (0, 0)),
        ],
        out_specs=pl.BlockSpec((b_tile, OUT_PAD), lambda b, s: (b, 0)),
        scratch_shapes=[pltpu.VMEM((b_tile, Cs), jnp.float32),
                        pltpu.VMEM((b_tile, Cf), jnp.float32)],
        compiler_params=pltpu.CompilerParams(
            dimension_semantics=("parallel", "arbitrary"),
            vmem_limit_bytes=_vmem_limit_bytes(
                b_tile, Cs, Cf, ss_tile, sf_tile, D, OUT_PAD)),
        cost_estimate=cost,
    )(slow, fast, w_rs, w_rf, b_rec, w_fc1p, b_fc1p)

    # Slice off batch / lane padding, then out.unsqueeze(2).
    return out_padded[:B, :nc][:, :, None]


# --------------------------------------------------------------------------- #
# Parameters & reference
# --------------------------------------------------------------------------- #
def make_params(key, c_slow, c_fast, in_dim, num_classes=2):
    """Deterministic synthetic parameters (module __init__ defines shapes).

    PyTorch nn.Linear stores weight as (out, in); we pre-transpose to (in, out)
    and pre-split the head projection into slow/fast halves to avoid the
    lane-axis concat in the kernel.
    """
    k1, k2, k3, k4 = jax.random.split(key, 4)
    c_in = c_slow + c_fast
    w_rec_pt = jax.random.normal(k1, (in_dim, c_in), jnp.float32) * 0.05    # (out, in)
    b_rec_pt = jax.random.normal(k2, (in_dim,), jnp.float32) * 0.01
    w_fc1_pt = jax.random.normal(k3, (num_classes, in_dim), jnp.float32) * 0.05
    b_fc1_pt = jax.random.normal(k4, (num_classes,), jnp.float32) * 0.01
    return {
        "w_rec_slow": w_rec_pt[:, :c_slow].T,          # (Cs, D)
        "w_rec_fast": w_rec_pt[:, c_slow:].T,          # (Cf, D)
        "b_rec": b_rec_pt.reshape(1, in_dim),          # (1, D)
        "w_fc1": w_fc1_pt.T,                           # (D, 2)
        "b_fc1": b_fc1_pt.reshape(1, num_classes),     # (1, 2)
    }


def reference_forward(x2_slow, x2_fast, params):
    """Pure-JAX reference (mirrors the kernel's bf16 activation feed)."""
    B = x2_slow.shape[0]
    slow = x2_slow.reshape(B, x2_slow.shape[1], -1).astype(jnp.bfloat16).astype(jnp.float32)
    fast = x2_fast.reshape(B, x2_fast.shape[1], -1).astype(jnp.bfloat16).astype(jnp.float32)
    slow_pool = jnp.mean(slow, axis=-1)
    fast_pool = jnp.mean(fast, axis=-1)
    rec = (slow_pool @ params["w_rec_slow"]
           + fast_pool @ params["w_rec_fast"]
           + params["b_rec"])
    x = jnp.maximum(rec, 0.0)
    out = x @ params["w_fc1"] + params["b_fc1"]
    return out[:, :, None]


# --------------------------------------------------------------------------- #
# Demo
# --------------------------------------------------------------------------- #
if __name__ == "__main__":
    key = jax.random.PRNGKey(0)
    k_slow, k_fast, k_params = jax.random.split(key, 3)

    # Small shapes: B=2, slow pathway (Cs=16, Ts=4), fast pathway (Cf=8, Tf=16),
    # spatial 8x8, TRANSLATION_INPUT_FEATURES (in_dim) = 32.
    B, Cs, Cf, Ts, Tf, H, W = 2, 16, 8, 4, 16, 8, 8
    in_dim = 32

    x2_slow = jax.random.normal(k_slow, (B, Cs, Ts, H, W), jnp.float32)
    x2_fast = jax.random.normal(k_fast, (B, Cf, Tf, H, W), jnp.float32)
    params = make_params(k_params, Cs, Cf, in_dim)

    # Force a 2-step streaming S reduction at these toy sizes so the
    # accumulator init/finalize path is actually exercised.
    out = action2state_forward(x2_slow, x2_fast, params, s_tile=128)
    out = jax.block_until_ready(out)

    ref = reference_forward(x2_slow, x2_fast, params)
    assert out.shape == (B, 2, 1), out.shape
    assert jnp.allclose(out, ref, atol=1e-4, rtol=1e-4), (out, ref)

    print("KERNEL_OK")
</pallas_src>

<mosaic_0001>
module attributes {stable_mosaic.version = 11 : i64} {
  func.func @_action2state_kernel(%arg0: i32, %arg1: i32, %arg2: memref<8x16x128xbf16, #tpu.memory_space<vmem>>, %arg3: memref<8x8x512xbf16, #tpu.memory_space<vmem>>, %arg4: memref<16x32xf32, #tpu.memory_space<vmem>>, %arg5: memref<8x32xf32, #tpu.memory_space<vmem>>, %arg6: memref<1x32xf32, #tpu.memory_space<vmem>>, %arg7: memref<32x128xf32, #tpu.memory_space<vmem>>, %arg8: memref<1x128xf32, #tpu.memory_space<vmem>>, %arg9: memref<8x128xf32, #tpu.memory_space<vmem>>, %arg10: memref<8x16xf32, #tpu.memory_space<vmem>>, %arg11: memref<8x8xf32, #tpu.memory_space<vmem>>) attributes {dimension_semantics = [#tpu.dimension_semantics<parallel>, #tpu.dimension_semantics<arbitrary>], iteration_bounds = array<i64: 1, 2>, scalar_prefetch = 0 : i64, scratch_operands = 2 : i64, tpu.core_type = #tpu.core_type<tc>, window_params = [{transform_indices = @transform_0, window_bounds = array<i64: 8, 16, 128>}, {transform_indices = @transform_1, window_bounds = array<i64: 8, 8, 512>}, {pipeline_mode = #tpu.pipeline_mode<synchronous>, transform_indices = @transform_2, window_bounds = array<i64: 16, 32>}, {pipeline_mode = #tpu.pipeline_mode<synchronous>, transform_indices = @transform_3, window_bounds = array<i64: 8, 32>}, {pipeline_mode = #tpu.pipeline_mode<synchronous>, transform_indices = @transform_4, window_bounds = array<i64: 1, 32>}, {pipeline_mode = #tpu.pipeline_mode<synchronous>, transform_indices = @transform_5, window_bounds = array<i64: 32, 128>}, {pipeline_mode = #tpu.pipeline_mode<synchronous>, transform_indices = @transform_6, window_bounds = array<i64: 1, 128>}, {transform_indices = @transform_7, window_bounds = array<i64: 8, 128>}]} {
    %c0_i32 = arith.constant 0 : i32
    %0 = arith.cmpi eq, %arg1, %c0_i32 : i32
    %1 = arith.extui %0 : i1 to i32
    %c0_i32_0 = arith.constant 0 : i32
    %2 = arith.cmpi ne, %1, %c0_i32_0 : i32
    scf.if %2 {
      %cst_16 = arith.constant 0.000000e+00 : f32
      %18 = vector.broadcast %cst_16 : f32 to vector<8x16xf32>
      %c0_17 = arith.constant 0 : index
      %c0_18 = arith.constant 0 : index
      %19 = vector.load %arg10[%c0_17, %c0_18] : memref<8x16xf32, #tpu.memory_space<vmem>>, vector<8x16xf32>
      tpu.vector_store %arg10[%c0_17, %c0_18], %18 {strides = array<i32>} : memref<8x16xf32, #tpu.memory_space<vmem>>, vector<8x16xf32>,
      %cst_19 = arith.constant 0.000000e+00 : f32
      %20 = vector.broadcast %cst_19 : f32 to vector<8x8xf32>
      %c0_20 = arith.constant 0 : index
      %c0_21 = arith.constant 0 : index
      %21 = vector.load %arg11[%c0_20, %c0_21] : memref<8x8xf32, #tpu.memory_space<vmem>>, vector<8x8xf32>
      tpu.vector_store %arg11[%c0_20, %c0_21], %20 {strides = array<i32>} : memref<8x8xf32, #tpu.memory_space<vmem>>, vector<8x8xf32>,
    } else {
    }
    %c0 = arith.constant 0 : index
    %c0_1 = arith.constant 0 : index
    %3 = vector.load %arg10[%c0, %c0_1] : memref<8x16xf32, #tpu.memory_space<vmem>>, vector<8x16xf32>
    %c0_2 = arith.constant 0 : index
    %c0_3 = arith.constant 0 : index
    %c0_4 = arith.constant 0 : index
    %4 = vector.load %arg2[%c0_2, %c0_3, %c0_4] : memref<8x16x128xbf16, #tpu.memory_space<vmem>>, vector<8x16x128xbf16>
    %5 = arith.extf %4 : vector<8x16x128xbf16> to vector<8x16x128xf32>
    %cst = arith.constant dense<0.000000e+00> : vector<8x16xf32>
    %6 = vector.multi_reduction <add>, %5, %cst [2] : vector<8x16x128xf32> to vector<8x16xf32>
    %7 = arith.addf %3, %6 : vector<8x16xf32>
    %c0_5 = arith.constant 0 : index
    %c0_6 = arith.constant 0 : index
    %8 = vector.load %arg10[%c0_5, %c0_6] : memref<8x16xf32, #tpu.memory_space<vmem>>, vector<8x16xf32>
    tpu.vector_store %arg10[%c0_5, %c0_6], %7 {strides = array<i32>} : memref<8x16xf32, #tpu.memory_space<vmem>>, vector<8x16xf32>,
    %c0_7 = arith.constant 0 : index
    %c0_8 = arith.constant 0 : index
    %9 = vector.load %arg11[%c0_7, %c0_8] : memref<8x8xf32, #tpu.memory_space<vmem>>, vector<8x8xf32>
    %c0_9 = arith.constant 0 : index
    %c0_10 = arith.constant 0 : index
    %c0_11 = arith.constant 0 : index
    %10 = vector.load %arg3[%c0_9, %c0_10, %c0_11] : memref<8x8x512xbf16, #tpu.memory_space<vmem>>, vector<8x8x512xbf16>
    %11 = arith.extf %10 : vector<8x8x512xbf16> to vector<8x8x512xf32>
    %cst_12 = arith.constant dense<0.000000e+00> : vector<8x8xf32>
    %12 = vector.multi_reduction <add>, %11, %cst_12 [2] : vector<8x8x512xf32> to vector<8x8xf32>
    %13 = arith.addf %9, %12 : vector<8x8xf32>
    %c0_13 = arith.constant 0 : index
    %c0_14 = arith.constant 0 : index
    %14 = vector.load %arg11[%c0_13, %c0_14] : memref<8x8xf32, #tpu.memory_space<vmem>>, vector<8x8xf32>
    tpu.vector_store %arg11[%c0_13, %c0_14], %13 {strides = array<i32>} : memref<8x8xf32, #tpu.memory_space<vmem>>, vector<8x8xf32>,
    %c1_i32 = arith.constant 1 : i32
    %15 = arith.cmpi eq, %arg1, %c1_i32 : i32
    %16 = arith.extui %15 : i1 to i32
    %c0_i32_15 = arith.constant 0 : i32
    %17 = arith.cmpi ne, %16, %c0_i32_15 : i32
    scf.if %17 {
      %c0_16 = arith.constant 0 : index
      %c0_17 = arith.constant 0 : index
      %18 = vector.load %arg10[%c0_16, %c0_17] : memref<8x16xf32, #tpu.memory_space<vmem>>, vector<8x16xf32>
      %c0_18 = arith.constant 0 : index
      %c0_19 = arith.constant 0 : index
      %19 = vector.load %arg4[%c0_18, %c0_19] : memref<16x32xf32, #tpu.memory_space<vmem>>, vector<16x32xf32>
      %cst_20 = arith.constant dense<0.000000e+00> : vector<8x32xf32>
      %20 = tpu.matmul %18, %19, %cst_20 {dimension_numbers = #tpu.dot_dimension_numbers<[1], [0], [0], [1], [0, 0, 1, 1], [], []>} : vector<8x16xf32>, vector<16x32xf32>, vector<8x32xf32> -> vector<8x32xf32>
      %c0_21 = arith.constant 0 : index
      %c0_22 = arith.constant 0 : index
      %21 = vector.load %arg11[%c0_21, %c0_22] : memref<8x8xf32, #tpu.memory_space<vmem>>, vector<8x8xf32>
      %c0_23 = arith.constant 0 : index
      %c0_24 = arith.constant 0 : index
      %22 = vector.load %arg5[%c0_23, %c0_24] : memref<8x32xf32, #tpu.memory_space<vmem>>, vector<8x32xf32>
      %cst_25 = arith.constant dense<0.000000e+00> : vector<8x32xf32>
      %23 = tpu.matmul %21, %22, %cst_25 {dimension_numbers = #tpu.dot_dimension_numbers<[1], [0], [0], [1], [0, 0, 1, 1], [], []>} : vector<8x8xf32>, vector<8x32xf32>, vector<8x32xf32> -> vector<8x32xf32>
      %24 = arith.addf %20, %23 : vector<8x32xf32>
      %c0_26 = arith.constant 0 : index
      %c0_27 = arith.constant 0 : index
      %25 = vector.load %arg6[%c0_26, %c0_27] : memref<1x32xf32, #tpu.memory_space<vmem>>, vector<1x32xf32>
      %26 = vector.broadcast %25 : vector<1x32xf32> to vector<8x32xf32>
      %27 = arith.addf %24, %26 : vector<8x32xf32>
      %cst_28 = arith.constant 0.000000e+00 : f32
      %28 = vector.broadcast %cst_28 : f32 to vector<8x32xf32>
      %29 = arith.maximumf %27, %28 : vector<8x32xf32>
      %c0_29 = arith.constant 0 : index
      %c0_30 = arith.constant 0 : index
      %30 = vector.load %arg7[%c0_29, %c0_30] : memref<32x128xf32, #tpu.memory_space<vmem>>, vector<32x128xf32>
      %cst_31 = arith.constant dense<0.000000e+00> : vector<8x128xf32>
      %31 = tpu.matmul %29, %30, %cst_31 {dimension_numbers = #tpu.dot_dimension_numbers<[1], [0], [0], [1], [0, 0, 1, 1], [], []>} : vector<8x32xf32>, vector<32x128xf32>, vector<8x128xf32> -> vector<8x128xf32>
      %c0_32 = arith.constant 0 : index
      %c0_33 = arith.constant 0 : index
      %32 = vector.load %arg8[%c0_32, %c0_33] : memref<1x128xf32, #tpu.memory_space<vmem>>, vector<1x128xf32>
      %33 = vector.broadcast %32 : vector<1x128xf32> to vector<8x128xf32>
      %34 = arith.addf %31, %33 : vector<8x128xf32>
      %c0_34 = arith.constant 0 : index
      %c0_35 = arith.constant 0 : index
      %35 = vector.load %arg9[%c0_34, %c0_35] : memref<8x128xf32, #tpu.memory_space<vmem>>, vector<8x128xf32>
      tpu.vector_store %arg9[%c0_34, %c0_35], %34 {strides = array<i32>} : memref<8x128xf32, #tpu.memory_space<vmem>>, vector<8x128xf32>,
    } else {
    }
    return
  }
  func.func @transform_0(%arg0: i32, %arg1: i32) -> (i32, i32, i32) {
    %c0_i32 = arith.constant 0 : i32
    %c0_i32_0 = arith.constant 0 : i32
    return %arg0, %c0_i32, %arg1 : i32, i32, i32
  }
  func.func @transform_1(%arg0: i32, %arg1: i32) -> (i32, i32, i32) {
    %c0_i32 = arith.constant 0 : i32
    %c0_i32_0 = arith.constant 0 : i32
    return %arg0, %c0_i32, %arg1 : i32, i32, i32
  }
  func.func @transform_2(%arg0: i32, %arg1: i32) -> (i32, i32) {
    %c0_i32 = arith.constant 0 : i32
    %c0_i32_0 = arith.constant 0 : i32
    %c0_i32_1 = arith.constant 0 : i32
    return %c0_i32, %c0_i32_0 : i32, i32
  }
  func.func @transform_3(%arg0: i32, %arg1: i32) -> (i32, i32) {
    %c0_i32 = arith.constant 0 : i32
    %c0_i32_0 = arith.constant 0 : i32
    %c0_i32_1 = arith.constant 0 : i32
    return %c0_i32, %c0_i32_0 : i32, i32
  }
  func.func @transform_4(%arg0: i32, %arg1: i32) -> (i32, i32) {
    %c0_i32 = arith.constant 0 : i32
    %c0_i32_0 = arith.constant 0 : i32
    %c0_i32_1 = arith.constant 0 : i32
    return %c0_i32, %c0_i32_0 : i32, i32
  }
  func.func @transform_5(%arg0: i32, %arg1: i32) -> (i32, i32) {
    %c0_i32 = arith.constant 0 : i32
    %c0_i32_0 = arith.constant 0 : i32
    %c0_i32_1 = arith.constant 0 : i32
    return %c0_i32, %c0_i32_0 : i32, i32
  }
  func.func @transform_6(%arg0: i32, %arg1: i32) -> (i32, i32) {
    %c0_i32 = arith.constant 0 : i32
    %c0_i32_0 = arith.constant 0 : i32
    %c0_i32_1 = arith.constant 0 : i32
    return %c0_i32, %c0_i32_0 : i32, i32
  }
  func.func @transform_7(%arg0: i32, %arg1: i32) -> (i32, i32) {
    %c0_i32 = arith.constant 0 : i32
    %c0_i32_0 = arith.constant 0 : i32
    return %arg0, %c0_i32 : i32, i32
  }
}

</mosaic_0001>

<bundles_post_ra>
// kernel: tpu_custom_call.1
= control target key start
LH: loop header
LB: loop body
LE: loop exit
PB: predicated region body
PF: predicated region fallthrough
CT: control target
= control target key end

     0   :  { %s1595_s0 = inlined_call_operand.hbm [shape: bf16[8,16,256], index: 0, kind: input, shape index: {}]   ;;  %s1596_s1 = inlined_call_operand.hbm [shape: bf16[8,8,1024], index: 1, kind: input, shape index: {}]   ;;  %s1597_s2 = inlined_call_operand.hbm [shape: f32[16,32], index: 2, kind: input, shape index: {}]   ;;  %s1598_s3 = inlined_call_operand.hbm [shape: f32[8,32], index: 3, kind: input, shape index: {}]   ;;  %s1599_s4 = inlined_call_operand.vmem [shape: f32[1,32], index: 4, kind: input, shape index: {}]   ;;  %s1600_s5 = inlined_call_operand.hbm [shape: f32[32,128], index: 5, kind: input, shape index: {}]   ;;  %s1601_s6 = inlined_call_operand.vmem [shape: f32[1,128], index: 6, kind: input, shape index: {}]   ;;  %s1602_s7 = inlined_call_operand.hbm [shape: f32[8,128], index: 7, kind: output, shape index: {}]  }
   0x1   :  { %1607 = sst [smem:[#allocation23_spill]] %s1595_s0 }
   0x2   :  { %1608 = sst [smem:[#allocation24_spill]] %s1597_s2 }
   0x3   :  { %1609 = sst [smem:[#allocation25_spill]] %s1598_s3 }
   0x4   :  { %1610 = sst [smem:[#allocation26_spill]] %s1600_s5 }
   0x5   :  { %12 = vsyncpa [#allocation5], 0 }
   0x6   :  { %14 = vsyncpa [#allocation5 + $0x1], 0 }
   0x7   :  { %15 = vsyncpa [#allocation8], 0 }
   0x8   :  { %17 = vsyncpa [#allocation8 + $0x1], 0 }
   0x9   :  { %18 = vsyncpa [#allocation11], 0 }
   0xa   :  { %19 = vsyncpa [#allocation6], 0  ;;  %s1350_s24 = smov 0   ;;  %s1352_s25 = smov 0  }
   0xb   :  { %s1354_s26 = smov 0   ;;  %s1356_s27 = smov 0  }
   0xc   :  { %s1358_s28 = smov 0   ;;  %s1360_s29 = smov 0  }
   0xd LB: > { %1611 = sst [smem:[#allocation19_spill]] %s1284_s26  ;;  %s1379_s30 = sadd.s32 4294967295, %s1296_s29   ;;  %s1296_s29 = sphi %s1360_s29, %s25_s29   ;;  %s1292_s28 = sphi %s1358_s28, %s1632_s28   ;;  %s1288_s27 = sphi %s1356_s27, %s1631_s27   ;;  %s1284_s26 = sphi %s1354_s26, %s1627_s26   ;;  %s1280_s25 = sphi %s1352_s25, %s1630_s25   ;;  %s1276_s24 = sphi %s1350_s24, %s1629_s24  }
   0xe   : > { %1612 = sst [smem:[#allocation20_spill]] %s1296_s29  ;;  %p59_p0 = scmp.ne.s32.totalorder %s1280_s25, %s1276_s24 }
   0xf   : > { %p60_p1 = scmp.eq.s32.totalorder %s1379_s30, 0  ;;  %p879_p2 = scmp.ge.s32.totalorder %s1296_s29, 1 }
  0x10   : > { %p229_p3 = scmp.lt.s32.totalorder %s1296_s29, 3  ;;  %s1614_s2 = sld [smem:[#allocation24_spill]] }
  0x11   : > { %p1387_p4 = por %p60_p1, %p59_p0  ;;  %s1298_s13 = smov [#allocation9]  }
  0x12   : > { %p1394_p5 = pnand %p879_p2, %p229_p3  ;;  %s242_s14 = sshll.u32 %s1298_s13, 4  ;;  %s243_s14 = int_to_ptr.vmem [resolvable:$true] %s242_s14 }
  0x13   : > { %s1617_s3 = sld [smem:[#allocation25_spill]]  ;;  %s1603_s19 = smov 128  }
  0x14   : > { %p964_p6 = pneg %p1394_p5  ;;  %s1300_s20 = smov 8  }
  0x15   : > { %s1301_s21 = smov [#allocation10]   ;;  %s1618_s5 = sld [smem:[#allocation26_spill]] }
  0x16   : > { %s240_s11 = sshll.u32 %s1614_s2, 4  ;;  %p1402_p7 = pnand %p964_p6, %p60_p1  ;;  %s241_s11 = int_to_ptr.hbm [resolvable:$true] %s240_s11 }
  0x17   : > { %s257_s22 = sshll.u32 %s1301_s21, 4  ;;  %s1302_s10 = smov [#allocation12]   ;;  %s258_s22 = int_to_ptr.vmem [resolvable:$true] %s257_s22 }
  0x18   : > { %967 = dma.hbm_to_vmem [thread:$0]  (!%p1402_p7), %s241_s11, 256, %s243_s14, [#allocation8], %s1603_s19, %s1603_s19, %s1300_s20  }
  0x19   : > { %s255_s18 = sshll.u32 %s1617_s3, 4  ;;  %s271_s13 = sshll.u32 %s1302_s10, 4  ;;  %s256_s18 = int_to_ptr.hbm [resolvable:$true] %s255_s18  ;;  %s272_s13 = int_to_ptr.vmem [resolvable:$true] %s271_s13 }
  0x1a   : > { %970 = dma.hbm_to_vmem [thread:$0]  (!%p1402_p7), %s256_s18, 128, %s258_s22, [#allocation11]  }
  0x1b   : > { %s269_s9 = sshll.u32 %s1618_s5, 4  ;;  %s34_s11 = sadd.s32 1, %s1292_s28  ;;  %s270_s9 = int_to_ptr.hbm [resolvable:$true] %s269_s9 }
  0x1c   : > { %973 = dma.hbm_to_vmem [thread:$0]  (!%p1402_p7), %s270_s9, 512, %s272_s13, [#allocation11], %s1603_s19, %s1603_s19, %s1300_s20  }
  0x1d   : > { %p35_p8 = scmp.ge.s32.totalorder %s34_s11, 2  ;;  %s46_s14 = sadd.s32 1, %s1284_s26 }
  0x1e   : > { %p53_p9 = scmp.ne.s32.totalorder %s1284_s26, %s1280_s25  ;;  %p54_p10 = scmp.eq.s32.totalorder %s1296_s29, 0 }
  0x1f   : > { %s1634_s11 = smov (%p35_p8, %s34_s11), 0  ;;  %p984_p12 = scmp.lt.s32.totalorder %s1296_s29, 2 }
  0x20   : > { %1619 = sst [smem:[#allocation21_spill]] %s1634_s11  ;;  %p1429_p11 = por %p54_p10, %p53_p9 }
  0x21   : > { %s42_s15 = ssub.s32 %s1292_s28, %s1634_s11  ;;  %s288_s17 = sand.u32 1, %s1284_s26  }
  0x22   : > { %p44_p13 = scmp.eq.s32.totalorder %s42_s15, 0  ;;  %s884_s18 = sshll.u32 %s288_s17, 6 }
  0x23   : > { %s885_s20 = sshll.u32 %s1292_s28, 2  ;;  %s1622_s0 = sld [smem:[#allocation23_spill]] }
  0x24   : > { %s1439_s21 = scalar_select %p44_p13, %s1284_s26, %s46_s14  }
  0x25   : > { %s292_s10 = scalar_lea.vmem [#allocation4], %s884_s18  ;;  %p1448_p0 = pnand %p984_p12, %p1429_p11 }
  0x26   : > { %1621 = sst [smem:[#allocation22_spill]] %s1439_s21  ;;  %s302_s13 = sshll.u32 %s292_s10, 4  ;;  %s303_s13 = int_to_ptr.vmem [resolvable:$true] %s302_s13 }
  0x27   : > { %s312_s15 = sand.u32 1, %s1296_s29   ;;  %s289_s2 = scalar_lea.sflag [#allocation5], %s288_s17 }
  0x28   : > { %s1303_s14 = smov 64   ;;  %s1304_s3 = smov 4  }
  0x29   : > { %s299_s24 = scalar_lea.hbm %s1622_s0, %s885_s20  ;;  %s1624_s22 = smov 128  }
  0x2a   : > { %s300_s9 = sshll.u32 %s299_s24, 4  ;;  %s886_s20 = sshll.u32 %s288_s17, 7  ;;  %s301_s9 = int_to_ptr.hbm [resolvable:$true] %s300_s9 }
  0x2b   : > { %977 = dma.hbm_to_vmem [thread:$0]  (!%p1448_p0), %s301_s9, 1024, %s303_s13, %s289_s2, %s1624_s22, %s1303_s14, %s1304_s3  }
  0x2c   : > { %s904_s18 = sshll.u32 %s1292_s28, 4  ;;  %s316_s0 = scalar_lea.vmem [#allocation7], %s886_s20 }
  0x2d   : > { %s324_s16 = scalar_lea.hbm %s1596_s1, %s904_s18  ;;  %s327_s5 = sshll.u32 %s316_s0, 4  ;;  %s328_s5 = int_to_ptr.vmem [resolvable:$true] %s327_s5 }
  0x2e   : > { %s325_s10 = sshll.u32 %s324_s16, 4  ;;  %s313_s11 = scalar_lea.sflag [#allocation8], %s312_s15  ;;  %s326_s10 = int_to_ptr.hbm [resolvable:$true] %s325_s10 }
  0x2f   : > { %s1305_s21 = smov 512   ;;  %s1306_s26 = smov 256  }
  0x30   : > { %s1307_s29 = smov 16   ;;  %339 = sbr.rel (%p1394_p5) target bundleno = 534 (0x216), region = 48 }
  0x31   : > { %980 = dma.hbm_to_vmem [thread:$0]  (!%p1448_p0), %s326_s10, 2048, %s328_s5, %s313_s11, %s1305_s21, %s1306_s26, %s1307_s29  }
  0x32   : > { %s341_s2 = sand.u32 (!%p1394_p5), 1, %s1280_s25  }
  0x33   : > { %s890_s3 = sshll.u32 (!%p1394_p5), %s341_s2, 6  ;;  %s342_s17 = scalar_lea.sflag (!%p1394_p5), [#allocation5], %s341_s2 }
  0x34   : > { %s1465_s9 = scalar_lea.vmem (!%p1394_p5), [#allocation4], %s890_s3 }
  0x35   : > { %1255 = dma.done.wait (%p1387_p4), %s342_s17, 1024  }
  0x36   : > { %1257 = vsyncadd (%p1387_p4), %s342_s17, 4294966272  ;;  %s351_s0 = sand.u32 1, %s1379_s30   ;;  %s891_s19 = sshll.u32 %s341_s2, 7 }
  0x37   : > { %s352_s5 = scalar_lea.sflag [#allocation8], %s351_s0  ;;  %s1472_s26 = scalar_lea.vmem [#allocation7], %s891_s19 }
  0x38   : > { %1259 = dma.done.wait (%p1387_p4), %s352_s5, 2048  }
  0x39   : > { %1261 = vsyncadd (%p1387_p4), %s352_s5, 4294965248 }
  0x3a   : > { %1263 = dma.done.wait (%p60_p1), [#allocation8], 256  }
  0x3b   : > { %1265 = vsyncadd (%p60_p1), [#allocation8], 4294967040 }
  0x3c   : > { %1267 = dma.done.wait (%p60_p1), [#allocation11], 640  }
  0x3d   : > { %1269 = vsyncadd (%p60_p1), [#allocation11], 4294966656  ;;  %p895_p2 = scmp.ne.s32.totalorder %s1288_s27, 0 }
  0x3f   : > { %408 = sbr.rel (%p895_p2) target bundleno = 71 (0x47), region = 72 }
  0x44   : > { %vm409_vm0 = vcmask 130048   ;;  %vm411_vm1 = vcmask 64512   ;;  %v1308_v0 = vmov 0.0  }
  0x45   : > { %410 = vst.msk [vmem:[#allocation2] sm:$0xff] %vm409_vm0, %v1308_v0 }
  0x46   : > { %412 = vst.msk [vmem:[#allocation3] sm:$0xff] %vm411_vm1, %v1308_v0 }
  0x47 PF: > { %v938_v1 = vld [vmem:[%s1465_s9 + $0x10] sm:$0xff]   ;;  %v937_v2 = vld [vmem:[%s1465_s9 + $0x8] sm:$0xff]   ;;  %v906_v3 = vld [vmem:[%s1465_s9] sm:$0xff]   ;;  %vm499_vm2 = vcmask 130112   ;;  %vm522_vm3 = vcmask 1041409   ;;  %vm524_vm4 = vcmask 1042434  }
  0x48   : > { %v915_v4 = vunpack.c.l.bf16 %v938_v1  ;;  %v911_v5 = vunpack.c.l.bf16 %v937_v2  ;;  %v907_v6 = vunpack.c.l.bf16 %v906_v3  ;;  %v543_v7 = vld [vmem:[%s1472_s26 + $0x10] sm:$0xff]  ;;  %v541_v8 = vld [vmem:[%s1472_s26] sm:$0xff]  ;;  %v544_v13 = vld [vmem:[%s1472_s26 + $0x18] sm:$0xff]  ;;  %v916_v15 = vunpack.c.h.bf16 %v938_v1  ;;  %p896_p1 = scmp.ne.s32.totalorder %s1288_s27, 1 }
  0x49   : > { %v561_v9 = vunpack.c.l.bf16 %v543_v7  ;;  %v562_v10 = vunpack.c.h.bf16 %v543_v7  ;;  %v557_v11 = vunpack.c.l.bf16 %v541_v8  ;;  %v558_v12 = vunpack.c.h.bf16 %v541_v8  ;;  %v542_v14 = vld [vmem:[%s1472_s26 + $0x8] sm:$0xff]  ;;  %v545_v22 = vld [vmem:[%s1472_s26 + $0x20] sm:$0xff]  ;;  %v939_v30 = vld [vmem:[%s1465_s9 + $0x18] sm:$0xff]  }
  0x4a   : > { %454 = vadd.xlane.f32.xlu2 %v915_v4  ;;  %450 = vadd.xlane.f32.xlu1 %v911_v5  ;;  %v912_v16 = vunpack.c.h.bf16 %v937_v2  ;;  %v563_v17 = vunpack.c.l.bf16 %v544_v13  ;;  %v559_v19 = vunpack.c.l.bf16 %v542_v14  ;;  %v908_v21 = vunpack.c.h.bf16 %v906_v3  ;;  %v546_v29 = vld [vmem:[%s1472_s26 + $0x28] sm:$0xff]  ;;  %v547_v36 = vld [vmem:[%s1472_s26 + $0x30] sm:$0xff]  ;;  %v940_v41 = vld [vmem:[%s1465_s9 + $0x20] sm:$0xff]  }
  0x4b   : > { %446 = vadd.xlane.f32.xlu0 %v907_v6  ;;  %v594_v18 = vadd.f32 %v562_v10, %v561_v9  ;;  %v589_v20 = vadd.f32 %v558_v12, %v557_v11  ;;  %v564_v23 = vunpack.c.h.bf16 %v544_v13  ;;  %v560_v24 = vunpack.c.h.bf16 %v542_v14  ;;  %v548_v42 = vld [vmem:[%s1472_s26 + $0x38] sm:$0xff]  ;;  %v549_v48 = vld [vmem:[%s1472_s26 + $0x40] sm:$0xff]  ;;  %v941_v53 = vld [vmem:[%s1465_s9 + $0x28] sm:$0xff]  }
  0x4c   : > { %v565_v27 = vunpack.c.l.bf16 %v545_v22  ;;  %v566_v28 = vunpack.c.h.bf16 %v545_v22  ;;  %v567_v33 = vunpack.c.l.bf16 %v546_v29  ;;  %v919_v35 = vunpack.c.l.bf16 %v939_v30  ;;  %v550_v54 = vld [vmem:[%s1472_s26 + $0x48] sm:$0xff]  ;;  %v551_v59 = vld [vmem:[%s1472_s26 + $0x50] sm:$0xff]  ;;  %v552_v1 = vld [vmem:[%s1472_s26 + $0x58] sm:$0xff] }
  0x4d   : > { %v595_v25 = vadd.f32 %v594_v18, %v563_v17  ;;  %v590_v26 = vadd.f32 %v589_v20, %v559_v19  ;;  %v568_v37 = vunpack.c.h.bf16 %v546_v29  ;;  %v569_v39 = vunpack.c.l.bf16 %v547_v36  ;;  %v942_v2 = vld [vmem:[%s1465_s9 + $0x30] sm:$0xff]   ;;  %v553_v8 = vld [vmem:[%s1472_s26 + $0x60] sm:$0xff]  ;;  %v943_v12 = vld [vmem:[%s1465_s9 + $0x38] sm:$0xff]  }
  0x4e   : > { %v599_v34 = vadd.f32 %v566_v28, %v565_v27  ;;  %v570_v40 = vunpack.c.h.bf16 %v547_v36  ;;  %v923_v44 = vunpack.c.l.bf16 %v940_v41  ;;  %v571_v45 = vunpack.c.l.bf16 %v548_v42  ;;  %v555_v9 = vld [vmem:[%s1472_s26 + $0x70] sm:$0xff]  ;;  %v554_v17 = vld [vmem:[%s1472_s26 + $0x68] sm:$0xff]  ;;  %v556_v18 = vld [vmem:[%s1472_s26 + $0x78] sm:$0xff] }
  0x4f   : > { %v596_v31 = vadd.f32 %v595_v25, %v564_v23  ;;  %v591_v32 = vadd.f32 %v590_v26, %v560_v24  ;;  %v920_v47 = vunpack.c.h.bf16 %v939_v30  ;;  %v572_v49 = vunpack.c.h.bf16 %v548_v42 }
  0x50   : > { %v600_v38 = vadd.f32 %v599_v34, %v567_v33  ;;  %v604_v46 = vadd.f32 %v570_v40, %v569_v39  ;;  %v573_v51 = vunpack.c.l.bf16 %v549_v48  ;;  %v574_v52 = vunpack.c.h.bf16 %v549_v48 }
  0x51   : > { %v927_v56 = vunpack.c.l.bf16 %v941_v53  ;;  %v575_v57 = vunpack.c.l.bf16 %v550_v54  ;;  %v924_v60 = vunpack.c.h.bf16 %v940_v41  ;;  %v577_v61 = vunpack.c.l.bf16 %v551_v59 }
  0x52   : > { %456 = vadd.xlane.f32.xlu2 %v916_v15  ;;  %452 = vadd.xlane.f32.xlu1 %v912_v16  ;;  %v601_v43 = vadd.f32 %v600_v38, %v568_v37  ;;  %v605_v50 = vadd.f32 %v604_v46, %v571_v45  ;;  %v609_v58 = vadd.f32 %v574_v52, %v573_v51  ;;  %v578_v62 = vunpack.c.h.bf16 %v551_v59 }
  0x53   : > { %448 = vadd.xlane.f32.xlu0 %v908_v21  ;;  %v576_v63 = vunpack.c.h.bf16 %v550_v54  ;;  %v579_v3 = vunpack.c.l.bf16 %v552_v1  ;;  %v931_v6 = vunpack.c.l.bf16 %v942_v2  ;;  %v928_v7 = vunpack.c.h.bf16 %v941_v53 }
  0x54   : > { %v606_v55 = vadd.f32 %v605_v50, %v572_v49  ;;  %v610_v0 = vadd.f32 %v609_v58, %v575_v57  ;;  %v614_v4 = vadd.f32 %v578_v62, %v577_v61  ;;  %v580_v10 = vunpack.c.h.bf16 %v552_v1 }
  0x55   : > { %v581_v13 = vunpack.c.l.bf16 %v553_v8  ;;  %v582_v14 = vunpack.c.h.bf16 %v553_v8  ;;  %v585_v15 = vunpack.c.l.bf16 %v555_v9  ;;  %v586_v16 = vunpack.c.h.bf16 %v555_v9 }
  0x56   : > { %v611_v5 = vadd.f32 %v610_v0, %v576_v63  ;;  %v615_v11 = vadd.f32 %v614_v4, %v579_v3  ;;  %v935_v20 = vunpack.c.l.bf16 %v943_v12  ;;  %v583_v21 = vunpack.c.l.bf16 %v554_v17 }
  0x57   : > { %v619_v22 = vadd.f32 %v582_v14, %v581_v13  ;;  %v587_v23 = vunpack.c.l.bf16 %v556_v18  ;;  %v624_v24 = vadd.f32 %v586_v16, %v585_v15  ;;  %v932_v25 = vunpack.c.h.bf16 %v942_v2 }
  0x58   : > { %v616_v19 = vadd.f32 %v615_v11, %v580_v10  ;;  %v584_v26 = vunpack.c.h.bf16 %v554_v17  ;;  %v588_v28 = vunpack.c.h.bf16 %v556_v18  ;;  %v494_v48 = vlaneseq }
  0x59   : > { %v620_v27 = vadd.f32 %v619_v22, %v583_v21  ;;  %v625_v29 = vadd.f32 %v624_v24, %v587_v23  ;;  %vm526_vm5 = vcmask 1043459   ;;  %vm528_vm6 = vcmask 1044484  }
  0x5a   : > { %597 = vadd.xlane.f32.xlu2 %v596_v31  ;;  %592 = vadd.xlane.f32.xlu1 %v591_v32  ;;  %v936_v32 = vunpack.c.h.bf16 %v943_v12  ;;  %v1511_v49 = vand.u32 127, %v494_v48  ;;  %vm530_vm7 = vcmask 1045509   ;;  %vm532_vm8 = vcmask 1046534  }
  0x5b   : > { %458 = vadd.xlane.f32.xlu0 %v919_v35  ;;  %v621_v30 = vadd.f32 %v620_v27, %v584_v26  ;;  %v626_v31 = vadd.f32 %v625_v29, %v588_v28  ;;  %vm534_vm9 = vcmask 1047559   ;;  %vm654_vm10 = vcmask 64512  }
  0x5c   : > { %v1514_v50 = vadd.s32 4294967288, %v1511_v49  ;;  %vm538_vm11 = vcmask 130048  }
  0x62   : > { %602 = vadd.xlane.f32.xlu1 %v601_v43  ;;  %462 = vadd.xlane.f32.xlu2 %v923_v44 }
  0x63   : > { %460 = vadd.xlane.f32.xlu0 %v920_v47 }
  0x6a   : > { %607 = vadd.xlane.f32.xlu1 %v606_v55  ;;  %466 = vadd.xlane.f32.xlu2 %v927_v56 }
  0x6b   : > { %464 = vadd.xlane.f32.xlu0 %v924_v60 }
  0x72   : > { %612 = vadd.xlane.f32.xlu1 %v611_v5  ;;  %470 = vadd.xlane.f32.xlu2 %v931_v6 }
  0x73   : > { %468 = vadd.xlane.f32.xlu0 %v928_v7 }
  0x7a   : > { %617 = vadd.xlane.f32.xlu1 %v616_v19  ;;  %474 = vadd.xlane.f32.xlu2 %v935_v20 }
  0x7b   : > { %472 = vadd.xlane.f32.xlu0 %v932_v25 }
  0x82   : > { %622 = vadd.xlane.f32.xlu1 %v621_v30  ;;  %627 = vadd.xlane.f32.xlu2 %v626_v31 }
  0x83   : > { %476 = vadd.xlane.f32.xlu0 %v936_v32 }
  0xbd   : > { %v455_v33 = vpop.xlane.xlu2 %454  ;;  %v451_v34 = vpop.xlane.xlu1 %450 }
  0xbe   : > { %v447_v35 = vpop.xlane.xlu0 %446  ;;  %v501_v56 = vperm.slane %v451_v34, %v1511_v49  ;;  %v504_v59 = vperm.slane %v455_v33, %v1511_v49 }
  0xbf   : > { %v496_v57 = vperm.slane %v447_v35, %v1511_v49 }
  0xc5   : > { %v457_v36 = vpop.xlane.xlu2 %456  ;;  %v453_v37 = vpop.xlane.xlu1 %452 }
  0xc6   : > { %v449_v38 = vpop.xlane.xlu0 %448  ;;  %v502_v54 = vperm.slane %v453_v37, %v1514_v50  ;;  %v505_v58 = vperm.slane %v457_v36, %v1514_v50  ;;  %v540_v36 = vld [vmem:[#allocation3] sm:$0xff] }
  0xc7   : > { %v498_v55 = vperm.slane %v449_v38, %v1514_v50 }
  0xc8   : > { %v503_v60 = vsel %vm499_vm2, %v502_v54, %v501_v56  ;;  %v506_v2 = vsel %vm499_vm2, %v505_v58, %v504_v59 }
  0xc9   : > { %v500_v61 = vsel %vm499_vm2, %v498_v55, %v496_v57 }
  0xca   : > { %v523_v5 = vsel %vm522_vm3, %v503_v60, %v500_v61 }
  0xcb   : > { %v525_v16 = vsel %vm524_vm4, %v506_v2, %v523_v5 }
  0xcd   : > { %v598_v39 = vpop.xlane.xlu2 %597  ;;  %v593_v40 = vpop.xlane.xlu1 %592 }
  0xce   : > { %v459_v41 = vpop.xlane.xlu0 %458  ;;  %v638_v3 = vperm.slane %v598_v39, %v1511_v49  ;;  %v637_v4 = vperm.slane %v593_v40, %v1511_v49  ;;  %v413_v39 = vld [vmem:[#allocation2] sm:$0xff] }
  0xcf   : > { %v507_v6 = vperm.slane %v459_v41, %v1511_v49 }
  0xd0   : > { %v645_v15 = vsel %vm522_vm3, %v638_v3, %v637_v4 }
  0xd5   : > { %v603_v42 = vpop.xlane.xlu1 %602  ;;  %v463_v43 = vpop.xlane.xlu2 %462 }
  0xd6   : > { %v461_v44 = vpop.xlane.xlu0 %460  ;;  %v639_v7 = vperm.slane %v603_v42, %v1511_v49  ;;  %v510_v12 = vperm.slane %v463_v43, %v1511_v49 }
  0xd7   : > { %v508_v0 = vperm.slane %v461_v44, %v1514_v50 }
  0xd8   : > { %v646_v19 = vsel %vm524_vm4, %v639_v7, %v645_v15 }
  0xd9   : > { %v509_v11 = vsel %vm499_vm2, %v508_v0, %v507_v6 }
  0xda   : > { %v527_v22 = vsel %vm526_vm5, %v509_v11, %v525_v16 }
  0xdd   : > { %v608_v45 = vpop.xlane.xlu1 %607  ;;  %v467_v46 = vpop.xlane.xlu2 %466 }
  0xde   : > { %v465_v47 = vpop.xlane.xlu0 %464  ;;  %v640_v9 = vperm.slane %v608_v45, %v1511_v49  ;;  %v513_v17 = vperm.slane %v467_v46, %v1511_v49 }
  0xdf   : > { %v511_v8 = vperm.slane %v465_v47, %v1514_v50 }
  0xe0   : > { %v647_v23 = vsel %vm526_vm5, %v640_v9, %v646_v19 }
  0xe1   : > { %v512_v20 = vsel %vm499_vm2, %v511_v8, %v510_v12 }
  0xe2   : > { %v529_v32 = vsel %vm528_vm6, %v512_v20, %v527_v22 }
  0xe5   : > { %v613_v51 = vpop.xlane.xlu1 %612  ;;  %v471_v52 = vpop.xlane.xlu2 %470 }
  0xe6   : > { %v469_v53 = vpop.xlane.xlu0 %468  ;;  %v641_v13 = vperm.slane %v613_v51, %v1511_v49  ;;  %v516_v21 = vperm.slane %v471_v52, %v1511_v49 }
  0xe7   : > { %v514_v10 = vperm.slane %v469_v53, %v1514_v50 }
  0xe8   : > { %v648_v27 = vsel %vm528_vm6, %v641_v13, %v647_v23 }
  0xe9   : > { %v515_v24 = vsel %vm499_vm2, %v514_v10, %v513_v17 }
  0xea   : > { %v531_v37 = vsel %vm530_vm7, %v515_v24, %v529_v32 }
  0xed   : > { %v618_v62 = vpop.xlane.xlu1 %617  ;;  %v475_v63 = vpop.xlane.xlu2 %474 }
  0xee   : > { %v473_v1 = vpop.xlane.xlu0 %472  ;;  %v642_v18 = vperm.slane %v618_v62, %v1511_v49  ;;  %v519_v34 = vperm.slane %v475_v63, %v1511_v49 }
  0xef   : > { %v517_v14 = vperm.slane %v473_v1, %v1514_v50 }
  0xf0   : > { %v649_v33 = vsel %vm530_vm7, %v642_v18, %v648_v27 }
  0xf1   : > { %v518_v28 = vsel %vm499_vm2, %v517_v14, %v516_v21 }
  0xf2   : > { %v533_v40 = vsel %vm532_vm8, %v518_v28, %v531_v37 }
  0xf5   : > { %v623_v25 = vpop.xlane.xlu1 %622  ;;  %v628_v26 = vpop.xlane.xlu2 %627 }
  0xf6   : > { %v643_v29 = vperm.slane %v623_v25, %v1511_v49  ;;  %v477_v30 = vpop.xlane.xlu0 %476  ;;  %v644_v31 = vperm.slane %v628_v26, %v1511_v49 }
  0xf7   : > { %v520_v35 = vperm.slane %v477_v30, %v1514_v50 }
  0xf8   : > { %v650_v38 = vsel %vm532_vm8, %v643_v29, %v649_v33 }
  0xf9   : > { %v521_v41 = vsel %vm499_vm2, %v520_v35, %v519_v34  ;;  %v651_v42 = vsel %vm534_vm9, %v644_v31, %v650_v38  ;;  %659 = sbr.rel (%p896_p1) target bundleno = 528 (0x210), region = 76 }
  0xfa   : > { %v535_v43 = vsel %vm534_vm9, %v521_v41, %v533_v40  ;;  %v653_v44 = vadd.f32 %v651_v42, %v540_v36 }
  0xfb   : > { %v537_v45 = vadd.f32 %v535_v43, %v413_v39 }
  0xfc   : > { %655 = vst.msk [vmem:[#allocation3] sm:$0xff] %vm654_vm10, %v653_v44 }
  0xfd   : > { %539 = vst.msk [vmem:[#allocation2] sm:$0xff] %vm538_vm11, %v537_v45 }
  0xfe   : > { %v662_v46 = vld [vmem:[#allocation9 + $0x8] sm:$0xff]  ;;  %v664_v47 = vld [vmem:[#allocation10] sm:$0xff]  ;;  %v661_v48 = vld [vmem:[#allocation9] sm:$0xff]  ;;  %vm725_vm12 = vcmask 261120  }
  0xff   : > { %705 = vmatpush.msra.mxu1 %v662_v46  ;;  %683 = vmatpush.msra.mxu0 %v664_v47  ;;  %v720_v51 = vld [vmem:[#allocation12 + $0x18] sm:$0xff]  ;;  %v719_v52 = vld [vmem:[#allocation12 + $0x10] sm:$0xff]  ;;  %v718_v53 = vld [vmem:[#allocation12 + $0x8] sm:$0xff] }
 0x100   : > { %741 = vmatpush.msra.mxu2 %v720_v51  ;;  %v717_v54 = vld [vmem:[#allocation12] sm:$0xff]  ;;  %v1050_v56 = vld [vmem:[%s1599_s4] ss:$0 sm:$0xff] }
 0x101   : > { %706 = vmatpush.msra.mxu1 %v661_v48  ;;  %v1051_v61 = vld [vmem:[%s1601_s6] ss:$0 sm:$0xff] }
 0x102   : > { %742 = vmatpush.msra.mxu2 %v719_v52 }
 0x103   : > { %v663_v49 = vld [vmem:[#allocation3] sm:$0xff] }
 0x104   : > { %v660_v50 = vld [vmem:[#allocation2] sm:$0xff]  ;;  %897 = vmatmul.msk.f32.vlgmr.msra.gmra.mxu0 %vm654_vm10, %v663_v49  ;;  %743 = vmatpush.msra.mxu2 %v718_v53 }
 0x105   : > { %898 = vmatmul.msk.f32.vlgmr.msra.gmra.mxu1 %vm538_vm11, %v660_v50 }
 0x106   : > { %744 = vmatpush.msra.mxu2 %v717_v54 }
 0x181   : > { %v685_v55 = vpop.f32.mrf.mxu0 }
 0x182   : > { %v708_v57 = vpop.f32.mrf.mxu1 }
 0x183   : > { %v709_v58 = vadd.f32 %v708_v57, %v685_v55 }
 0x185   : > { %v715_v59 = vadd.f32 %v1050_v56, %v709_v58 }
 0x187   : > { %v716_v60 = vmax.f32 %v715_v59, 0.0 }
 0x189   : > { %899 = vmatmul.msk.f32.vlgmr.msra.gmra.mxu2 %vm725_vm12, %v716_v60 }
 0x20c   : > { %v746_v62 = vpop.f32.mrf.mxu2 }
 0x20d   : > { %v747_v63 = vadd.f32 %v1051_v61, %v746_v62 }
 0x20f   : > { %749 = vst [vmem:[#allocation13] sm:$0xff] %v747_v63 }
 0x210 PF: > { %p988_p3 = scmp.eq.s32.totalorder %s1379_s30, 1  ;;  %s760_s13 = sshll.u32 %s1602_s7, 4  ;;  %s761_s13 = int_to_ptr.hbm [resolvable:$true] %s760_s13 }
 0x211   : > { %s1309_s15 = smov [#allocation13]  }
 0x212   : > { %s758_s14 = sshll.u32 %s1309_s15, 4  ;;  %s759_s14 = int_to_ptr.vmem [resolvable:$true] %s758_s14 }
 0x213   : > { %961 = dma.vmem_to_hbm [thread:$0]  (%p988_p3), %s759_s14, 128, %s761_s13, [#allocation6]  }
 0x214   : > { %1271 = dma.done.wait (%p988_p3), [#allocation6], 128  }
 0x215   : > { %1273 = vsyncadd (%p988_p3), [#allocation6], 4294967168 }
 0x216 PF: > { %s1625_s22 = sld [smem:[#allocation20_spill]]  ;;  %s1629_s24 = smov %s1280_s25 }
 0x217   : > { %s1626_s20 = sld [smem:[#allocation19_spill]]  ;;  %s1631_s27 = smov %s1292_s28 }
 0x218   : > { %s1627_s26 = sld [smem:[#allocation22_spill]] }
 0x219   : > { %s1628_s30 = sld [smem:[#allocation21_spill]] }
 0x21c   : > { %s25_s29 = sadd.s32 1, %s1625_s22  }
 0x21d   : > { %p22_p4 = scmp.ge.s32.totalorder %s25_s29, 4   ;;  %s1630_s25 = smov %s1626_s20 }
 0x21f   : > { %s1632_s28 = smov %s1628_s30  ;;  %24 = sbr.rel (!%p22_p4) target bundleno = 13 (0xd), region = 119 }
 0x224   :  { %774 = vsyncpa [#allocation5], 1 }
 0x225   :  { %776 = vsyncpa [#allocation5 + $0x1], 1 }
 0x226   :  { %777 = vsyncpa [#allocation8], 1 }
 0x227   :  { %779 = vsyncpa [#allocation8 + $0x1], 1 }
 0x228   :  { %780 = vsyncpa [#allocation11], 1 }
 0x229   :  { %781 = vsyncpa [#allocation6], 1 }
 0x22a   :  { %783 = vsyncpa [#allocation6 + $0x1], 1 }

</bundles_post_ra>
